<compile_context>
chip_gen: v6e
topology: v6e:2x2x1
jax: 0.10.0
libtpu: 0.0.40
codegen_flags: <defaults>
</compile_context>

<pallas_src>
import numpy as np
import jax
import jax.numpy as jnp
from jax.experimental import pallas as pl
from jax.experimental.pallas import tpu as pltpu

EPS = 1e-6
GAUSS_1D = (0.05, 0.25, 0.4, 0.25, 0.05)


def _gauss_toeplitz(n: int) -> np.ndarray:
    """A[i, j] = sum of 1-D Gaussian taps s in [-2, 2] with clamp(i+s) == j.

    Exactly the 1-D 5-tap Gaussian with replicate padding as an (n, n) matrix.
    """
    k = np.asarray(GAUSS_1D, dtype=np.float64)
    a = np.zeros((n, n), dtype=np.float64)
    for i in range(n):
        for s in range(-2, 3):
            j = min(max(i + s, 0), n - 1)
            a[i, j] += k[s + 2]
    return a


def _laplacian_matrices(h: int, w: int):
    """Constant matrices so that laplacian(d) = d - 4 * C_h @ d @ C_w^T.

    conv_gauss(img)             = A_h @ img @ A_w^T
    keep-even-pixels (mask E)   = diag(e_h) @ . @ diag(e_w)   (E is rank-1)
    conv_gauss(4 * E * blurred) = 4 * (A_h diag(e_h) A_h) @ img @ (A_w diag(e_w) A_w)^T
    """
    ah = _gauss_toeplitz(h)
    aw = _gauss_toeplitz(w)
    eh = np.zeros((h,), dtype=np.float64)
    eh[::2] = 1.0
    ew = np.zeros((w,), dtype=np.float64)
    ew[::2] = 1.0
    ch = ah @ np.diag(eh) @ ah          # (H, H) left factor
    cw = aw @ np.diag(ew) @ aw          # (W, W); kernel uses its transpose
    return np.asarray(ch, np.float32), np.asarray(cw.T, np.float32)


def _make_kernel(n_loss1: float, n_loss2: float):
    """n_loss1 = B*C*H*W (Charbonnier mean), n_loss2 = B*H*W (EdgeLoss mean,
    single channel since the two channels contribute identical values)."""

    def kernel(x_ref, y_ref, ch_ref, cwt_ref, out_ref, acc_ref):
        b = pl.program_id(0)

        @pl.when(b == 0)
        def _init():
            acc_ref[0] = 0.0
            acc_ref[1] = 0.0

        x = x_ref[...]                                   # (1, 2, H, W) f32
        x0 = x[0, 0]                                     # (H, W)
        x1 = x[0, 1]
        yf = y_ref[...][0, 0].astype(jnp.float32)        # (H, W)

        # ---- loss1: Charbonnier(x, y); integer labels broadcast over C ----
        d0 = x0 - yf
        d1 = x1 - yf
        l1 = jnp.sum(jnp.sqrt(d0 * d0 + EPS) + jnp.sqrt(d1 * d1 + EPS))

        # ---- loss2: EdgeLoss; C==2 specialization + Laplacian linearity ----
        p1 = 1.0 / (1.0 + jnp.exp(x0 - x1))              # softmax(x)[:, 1]
        d = p1 - yf                                      # softmax - onehot (ch 1)
        # laplacian(d) = d - 4 * C_h @ d @ C_w^T  (runs on the MXU)
        t = jnp.dot(ch_ref[...], d, preferred_element_type=jnp.float32)
        t = jnp.dot(t, cwt_ref[...], preferred_element_type=jnp.float32)
        lap = d - 4.0 * t
        l2 = jnp.sum(jnp.sqrt(lap * lap + EPS))

        acc_ref[0] += l1
        acc_ref[1] += l2

        @pl.when(b == pl.num_programs(0) - 1)
        def _finalize():
            loss1 = acc_ref[0] / n_loss1
            loss2 = acc_ref[1] / n_loss2
            # Charbonnier >= sqrt(EPS) > 0, so the denominator can never be 0
            # (matches the PyTorch module, which adds no epsilon here).
            inv = 1.0 / (loss1 + loss2)
            out_ref[0] = (loss1 * loss1 + loss2 * loss2) * inv

    return kernel


@jax.jit
def ce_loss(x, y):
    b, c, h, w = x.shape
    assert c == 2, "EdgeLoss is specialized for 2 classes (groups=2 in the spec)"
    ch_np, cwt_np = _laplacian_matrices(h, w)
    kernel = _make_kernel(float(b * c * h * w), float(b * h * w))

    out = pl.pallas_call(
        kernel,
        out_shape=jax.ShapeDtypeStruct((1,), jnp.float32),
        grid=(b,),
        in_specs=[
            pl.BlockSpec((1, c, h, w), lambda i: (i, 0, 0, 0)),   # logits
            pl.BlockSpec((1, 1, h, w), lambda i: (i, 0, 0, 0)),   # labels
            pl.BlockSpec((h, h), lambda i: (0, 0)),               # C_h (resident)
            pl.BlockSpec((w, w), lambda i: (0, 0)),               # C_w^T (resident)
        ],
        out_specs=pl.BlockSpec(memory_space=pltpu.MemorySpace.SMEM),
        scratch_shapes=[pltpu.SMEM((2,), jnp.float32)],           # [sum1, sum2]
        compiler_params=pltpu.CompilerParams(
            # The batch axis carries the loss reduction (SMEM accumulator),
            # so it must be "arbitrary" (sequential).
            dimension_semantics=("arbitrary",),
            # Explicit, chip-independent VMEM budget (usage here is only KBs).
            vmem_limit_bytes=32 * 1024 * 1024,
        ),
    )(x.astype(jnp.float32), y.astype(jnp.int32),
      jnp.asarray(ch_np), jnp.asarray(cwt_np))
    return out[0]


if __name__ == "__main__":
    key = jax.random.PRNGKey(0)
    kx, ky = jax.random.split(key)
    B, C, H, W = 2, 2, 16, 16                      # EdgeLoss requires C == 2
    x = jax.random.normal(kx, (B, C, H, W), dtype=jnp.float32)       # logits
    y = jax.random.randint(ky, (B, 1, H, W), 0, C, dtype=jnp.int32)  # labels

    loss = ce_loss(x, y)
    jax.block_until_ready(loss)
    print("KERNEL_OK")
</pallas_src>

<mosaic_0001>
module attributes {stable_mosaic.version = 11 : i64} {
  func.func @kernel(%arg0: i32, %arg1: memref<1x2x16x16xf32, #tpu.memory_space<vmem>>, %arg2: memref<1x1x16x16xi32, #tpu.memory_space<vmem>>, %arg3: memref<16x16xf32, #tpu.memory_space<vmem>>, %arg4: memref<16x16xf32, #tpu.memory_space<vmem>>, %arg5: memref<1xf32, #tpu.memory_space<smem>>, %arg6: memref<2xf32, #tpu.memory_space<smem>>) attributes {dimension_semantics = [#tpu.dimension_semantics<arbitrary>], iteration_bounds = array<i64: 2>, scalar_prefetch = 0 : i64, scratch_operands = 1 : i64, tpu.core_type = #tpu.core_type<tc>, window_params = [{transform_indices = @transform_0, window_bounds = array<i64: 1, 2, 16, 16>}, {transform_indices = @transform_1, window_bounds = array<i64: 1, 1, 16, 16>}, {pipeline_mode = #tpu.pipeline_mode<synchronous>, transform_indices = @transform_2, window_bounds = array<i64: 16, 16>}, {pipeline_mode = #tpu.pipeline_mode<synchronous>, transform_indices = @transform_3, window_bounds = array<i64: 16, 16>}, {transform_indices = @transform_4, window_bounds = array<i64: 1>}]} {
    %c0_i32 = arith.constant 0 : i32
    %0 = arith.cmpi eq, %arg0, %c0_i32 : i32
    %1 = arith.extui %0 : i1 to i32
    %c0_i32_0 = arith.constant 0 : i32
    %2 = arith.cmpi ne, %1, %c0_i32_0 : i32
    scf.if %2 {
      %cst_25 = arith.constant 0.000000e+00 : f32
      %c0_26 = arith.constant 0 : index
      %57 = memref.load %arg6[%c0_26] : memref<2xf32, #tpu.memory_space<smem>>
      memref.store %cst_25, %arg6[%c0_26] : memref<2xf32, #tpu.memory_space<smem>>
      %cst_27 = arith.constant 0.000000e+00 : f32
      %c1_28 = arith.constant 1 : index
      %58 = memref.load %arg6[%c1_28] : memref<2xf32, #tpu.memory_space<smem>>
      memref.store %cst_27, %arg6[%c1_28] : memref<2xf32, #tpu.memory_space<smem>>
    } else {
    }
    %c0 = arith.constant 0 : index
    %c0_1 = arith.constant 0 : index
    %c0_2 = arith.constant 0 : index
    %c0_3 = arith.constant 0 : index
    %3 = vector.load %arg1[%c0, %c0_1, %c0_2, %c0_3] : memref<1x2x16x16xf32, #tpu.memory_space<vmem>>, vector<1x2x16x16xf32>
    %4 = vector.extract_strided_slice %3 {offsets = [0, 0, 0, 0], sizes = [1, 1, 16, 16], strides = [1, 1, 1, 1]} : vector<1x2x16x16xf32> to vector<1x1x16x16xf32>
    %5 = vector.shape_cast %4 : vector<1x1x16x16xf32> to vector<16x16xf32>
    %6 = vector.extract_strided_slice %3 {offsets = [0, 1, 0, 0], sizes = [1, 1, 16, 16], strides = [1, 1, 1, 1]} : vector<1x2x16x16xf32> to vector<1x1x16x16xf32>
    %7 = vector.shape_cast %6 : vector<1x1x16x16xf32> to vector<16x16xf32>
    %c0_4 = arith.constant 0 : index
    %c0_5 = arith.constant 0 : index
    %c0_6 = arith.constant 0 : index
    %c0_7 = arith.constant 0 : index
    %8 = vector.load %arg2[%c0_4, %c0_5, %c0_6, %c0_7] : memref<1x1x16x16xi32, #tpu.memory_space<vmem>>, vector<1x1x16x16xi32>
    %9 = vector.shape_cast %8 : vector<1x1x16x16xi32> to vector<16x16xi32>
    %10 = arith.sitofp %9 : vector<16x16xi32> to vector<16x16xf32>
    %11 = arith.subf %5, %10 : vector<16x16xf32>
    %12 = arith.subf %7, %10 : vector<16x16xf32>
    %13 = arith.mulf %11, %11 : vector<16x16xf32>
    %cst = arith.constant 9.99999997E-7 : f32
    %14 = vector.broadcast %cst : f32 to vector<16x16xf32>
    %15 = arith.addf %13, %14 : vector<16x16xf32>
    %16 = math.sqrt %15 : vector<16x16xf32>
    %17 = arith.mulf %12, %12 : vector<16x16xf32>
    %cst_8 = arith.constant 9.99999997E-7 : f32
    %18 = vector.broadcast %cst_8 : f32 to vector<16x16xf32>
    %19 = arith.addf %17, %18 : vector<16x16xf32>
    %20 = math.sqrt %19 : vector<16x16xf32>
    %21 = arith.addf %16, %20 : vector<16x16xf32>
    %22 = vector.shape_cast %21 : vector<16x16xf32> to vector<1x16x16xf32>
    %cst_9 = arith.constant dense<0.000000e+00> : vector<1xf32>
    %23 = vector.multi_reduction <add>, %22, %cst_9 [1, 2] : vector<1x16x16xf32> to vector<1xf32>
    %24 = vector.shape_cast %23 : vector<1xf32> to vector<1x1x1xf32>
    %25 = vector.extract %24[0, 0, 0] : f32 from vector<1x1x1xf32>
    %26 = arith.subf %5, %7 : vector<16x16xf32>
    %27 = math.exp %26 : vector<16x16xf32>
    %cst_10 = arith.constant 1.000000e+00 : f32
    %28 = vector.broadcast %cst_10 : f32 to vector<16x16xf32>
    %29 = arith.addf %28, %27 : vector<16x16xf32>
    %cst_11 = arith.constant 1.000000e+00 : f32
    %30 = vector.broadcast %cst_11 : f32 to vector<16x16xf32>
    %31 = arith.divf %30, %29 : vector<16x16xf32>
    %32 = arith.subf %31, %10 : vector<16x16xf32>
    %c0_12 = arith.constant 0 : index
    %c0_13 = arith.constant 0 : index
    %33 = vector.load %arg3[%c0_12, %c0_13] : memref<16x16xf32, #tpu.memory_space<vmem>>, vector<16x16xf32>
    %cst_14 = arith.constant dense<0.000000e+00> : vector<16x16xf32>
    %34 = tpu.matmul %33, %32, %cst_14 {dimension_numbers = #tpu.dot_dimension_numbers<[1], [0], [0], [1], [0, 0, 1, 1], [], []>} : vector<16x16xf32>, vector<16x16xf32>, vector<16x16xf32> -> vector<16x16xf32>
    %c0_15 = arith.constant 0 : index
    %c0_16 = arith.constant 0 : index
    %35 = vector.load %arg4[%c0_15, %c0_16] : memref<16x16xf32, #tpu.memory_space<vmem>>, vector<16x16xf32>
    %cst_17 = arith.constant dense<0.000000e+00> : vector<16x16xf32>
    %36 = tpu.matmul %34, %35, %cst_17 {dimension_numbers = #tpu.dot_dimension_numbers<[1], [0], [0], [1], [0, 0, 1, 1], [], []>} : vector<16x16xf32>, vector<16x16xf32>, vector<16x16xf32> -> vector<16x16xf32>
    %cst_18 = arith.constant 4.000000e+00 : f32
    %37 = vector.broadcast %cst_18 : f32 to vector<16x16xf32>
    %38 = arith.mulf %37, %36 : vector<16x16xf32>
    %39 = arith.subf %32, %38 : vector<16x16xf32>
    %40 = arith.mulf %39, %39 : vector<16x16xf32>
    %cst_19 = arith.constant 9.99999997E-7 : f32
    %41 = vector.broadcast %cst_19 : f32 to vector<16x16xf32>
    %42 = arith.addf %40, %41 : vector<16x16xf32>
    %43 = math.sqrt %42 : vector<16x16xf32>
    %44 = vector.shape_cast %43 : vector<16x16xf32> to vector<1x16x16xf32>
    %cst_20 = arith.constant dense<0.000000e+00> : vector<1xf32>
    %45 = vector.multi_reduction <add>, %44, %cst_20 [1, 2] : vector<1x16x16xf32> to vector<1xf32>
    %46 = vector.shape_cast %45 : vector<1xf32> to vector<1x1x1xf32>
    %47 = vector.extract %46[0, 0, 0] : f32 from vector<1x1x1xf32>
    %c0_21 = arith.constant 0 : index
    %48 = memref.load %arg6[%c0_21] : memref<2xf32, #tpu.memory_space<smem>>
    %49 = arith.addf %48, %25 : f32
    %c0_22 = arith.constant 0 : index
    %50 = memref.load %arg6[%c0_22] : memref<2xf32, #tpu.memory_space<smem>>
    memref.store %49, %arg6[%c0_22] : memref<2xf32, #tpu.memory_space<smem>>
    %c1 = arith.constant 1 : index
    %51 = memref.load %arg6[%c1] : memref<2xf32, #tpu.memory_space<smem>>
    %52 = arith.addf %51, %47 : f32
    %c1_23 = arith.constant 1 : index
    %53 = memref.load %arg6[%c1_23] : memref<2xf32, #tpu.memory_space<smem>>
    memref.store %52, %arg6[%c1_23] : memref<2xf32, #tpu.memory_space<smem>>
    %c1_i32 = arith.constant 1 : i32
    %54 = arith.cmpi eq, %arg0, %c1_i32 : i32
    %55 = arith.extui %54 : i1 to i32
    %c0_i32_24 = arith.constant 0 : i32
    %56 = arith.cmpi ne, %55, %c0_i32_24 : i32
    scf.if %56 {
      %c0_25 = arith.constant 0 : index
      %57 = memref.load %arg6[%c0_25] : memref<2xf32, #tpu.memory_space<smem>>
      %cst_26 = arith.constant 1.024000e+03 : f32
      %58 = arith.divf %57, %cst_26 : f32
      %c1_27 = arith.constant 1 : index
      %59 = memref.load %arg6[%c1_27] : memref<2xf32, #tpu.memory_space<smem>>
      %cst_28 = arith.constant 5.120000e+02 : f32
      %60 = arith.divf %59, %cst_28 : f32
      %61 = arith.addf %58, %60 : f32
      %cst_29 = arith.constant 1.000000e+00 : f32
      %62 = arith.divf %cst_29, %61 : f32
      %63 = arith.mulf %58, %58 : f32
      %64 = arith.mulf %60, %60 : f32
      %65 = arith.addf %63, %64 : f32
      %66 = arith.mulf %65, %62 : f32
      %c0_30 = arith.constant 0 : index
      %67 = memref.load %arg5[%c0_30] : memref<1xf32, #tpu.memory_space<smem>>
      memref.store %66, %arg5[%c0_30] : memref<1xf32, #tpu.memory_space<smem>>
    } else {
    }
    return
  }
  func.func @transform_0(%arg0: i32) -> (i32, i32, i32, i32) {
    %c0_i32 = arith.constant 0 : i32
    %c0_i32_0 = arith.constant 0 : i32
    %c0_i32_1 = arith.constant 0 : i32
    %c0_i32_2 = arith.constant 0 : i32
    return %arg0, %c0_i32, %c0_i32_0, %c0_i32_1 : i32, i32, i32, i32
  }
  func.func @transform_1(%arg0: i32) -> (i32, i32, i32, i32) {
    %c0_i32 = arith.constant 0 : i32
    %c0_i32_0 = arith.constant 0 : i32
    %c0_i32_1 = arith.constant 0 : i32
    %c0_i32_2 = arith.constant 0 : i32
    return %arg0, %c0_i32, %c0_i32_0, %c0_i32_1 : i32, i32, i32, i32
  }
  func.func @transform_2(%arg0: i32) -> (i32, i32) {
    %c0_i32 = arith.constant 0 : i32
    %c0_i32_0 = arith.constant 0 : i32
    %c0_i32_1 = arith.constant 0 : i32
    return %c0_i32, %c0_i32_0 : i32, i32
  }
  func.func @transform_3(%arg0: i32) -> (i32, i32) {
    %c0_i32 = arith.constant 0 : i32
    %c0_i32_0 = arith.constant 0 : i32
    %c0_i32_1 = arith.constant 0 : i32
    return %c0_i32, %c0_i32_0 : i32, i32
  }
  func.func @transform_4(%arg0: i32) -> i32 {
    %c0_i32 = arith.constant 0 : i32
    %c0_i32_0 = arith.constant 0 : i32
    return %c0_i32 : i32
  }
}

</mosaic_0001>

<bundles_post_ra>
// kernel: ce_loss.1
= control target key start
LH: loop header
LB: loop body
LE: loop exit
PB: predicated region body
PF: predicated region fallthrough
CT: control target
= control target key end

     0   :  { %9 = vsyncpa [#allocation4], 0  ;;  %s1273_s0 = inlined_call_operand.hbm [shape: f32[2,2,16,16], index: 0, kind: input, shape index: {}]   ;;  %s1274_s1 = inlined_call_operand.hbm [shape: s32[2,1,16,16], index: 1, kind: input, shape index: {}]   ;;  %s1275_s2 = inlined_call_operand.hbm [shape: f32[16,16], index: 2, kind: input, shape index: {}]   ;;  %s1276_s3 = inlined_call_operand.hbm [shape: f32[16,16], index: 3, kind: input, shape index: {}]   ;;  %s1277_s4 = inlined_call_operand.hbm [shape: f32[1], index: 4, kind: output, shape index: {}]  }
   0x1   :  { %11 = vsyncpa [#allocation4 + $0x1], 0 }
   0x2   :  { %12 = vsyncpa [#allocation7], 0 }
   0x3   :  { %14 = vsyncpa [#allocation7 + $0x1], 0 }
   0x4   :  { %15 = vsyncpa [#allocation10], 0 }
   0x5   :  { %16 = vsyncpa [#allocation5], 0  ;;  %s1048_s15 = smov 0   ;;  %s1050_s16 = smov 0  }
   0x6   :  { %s1052_s17 = smov 0   ;;  %s1054_s18 = smov 0  }
   0x7 LB: > { %s1067_s19 = sadd.s32 4294967295, %s1013_s18   ;;  %p42_p0 = scmp.ne.s32.totalorder %s1005_s16, %s1001_s15  ;;  %s1013_s18 = sphi %s1054_s18, %s1294_s18   ;;  %s1009_s17 = sphi %s1052_s17, %s1293_s17   ;;  %s1005_s16 = sphi %s1050_s16, %s1292_s16   ;;  %s1001_s15 = sphi %s1048_s15, %s1291_s15  }
   0x8   : > { %p1278_p1 = scmp.eq.s32.totalorder %s1067_s19, 0  ;;  %p687_p2 = scmp.ge.s32.totalorder %s1013_s18, 1 }
   0x9   : > { %p142_p3 = scmp.lt.s32.totalorder %s1013_s18, 3  ;;  %s1015_s22 = smov [#allocation8]  }
   0xa   : > { %p1075_p4 = por %p1278_p1, %p42_p0  ;;  %s154_s23 = sshll.u32 %s1015_s22, 4  ;;  %s155_s23 = int_to_ptr.vmem [resolvable:$true] %s154_s23 }
   0xb   : > { %p1079_p5 = pnand %p687_p2, %p142_p3  ;;  %s1016_s25 = smov [#allocation9]  }
   0xc   : > { %s1280_s20 = scalar_select %p1075_p4, 1, 0 }
   0xd   : > { %p763_p6 = pneg %p1079_p5  ;;  %s167_s26 = sshll.u32 %s1016_s25, 4  ;;  %s168_s26 = int_to_ptr.vmem [resolvable:$true] %s167_s26 }
   0xe   : > { %s856_s27 = scalar_lea.vmem %s155_s23, 256  ;;  %p864_p12 = scmp.lt.s32.totalorder %s155_s23, %s155_s23 }
   0xf   : > { %p1087_p7 = pnand %p763_p6, %p1278_p1  ;;  %p857_p9 = scmp.ne.s32.totalorder %s155_s23, %s856_s27 }
  0x10   : > { %p865_p13 = scmp.lt.s32.totalorder %s856_s27, %s856_s27 }
  0x11   : > { %p847_p8 = pneg %p1087_p7 }
  0x12   : > { %p866_p0 = por %p865_p13, %p864_p12 }
  0x13   : > { %p859_p10 = pnand %p857_p9, %p847_p8 }
  0x15   : > { %p860_p11 = pneg %p859_p10 }
  0x17   : > { %p867_p2 = pnand %p866_p0, %p860_p11 }
  0x19   : > { %870 = shalt.err (!%p867_p2)
}
  0x1a   : > { %s1017_s28 = smov 128   ;;  %s1018_s29 = smov 8  }
  0x1b   : > { %766 = dma.hbm_to_vmem [thread:$0]  (!%p1087_p7), %s1275_s2, 256, %s155_s23, [#allocation7], %s1017_s28, %s1017_s28, %s1018_s29  }
  0x1c   : > { %s882_s6 = scalar_lea.vmem %s168_s26, 256  ;;  %p890_p10 = scmp.lt.s32.totalorder %s168_s26, %s168_s26 }
  0x1d   : > { %p883_p3 = scmp.ne.s32.totalorder %s168_s26, %s882_s6  ;;  %p891_p11 = scmp.lt.s32.totalorder %s882_s6, %s882_s6 }
  0x1f   : > { %p885_p6 = pnand %p883_p3, %p847_p8  ;;  %p892_p12 = por %p891_p11, %p890_p10 }
  0x21   : > { %p886_p9 = pneg %p885_p6 }
  0x23   : > { %p893_p13 = pnand %p892_p12, %p886_p9 }
  0x25   : > { %896 = shalt.err (!%p893_p13)
}
  0x26   : > { %769 = dma.hbm_to_vmem [thread:$0]  (!%p1087_p7), %s1276_s3, 256, %s168_s26, [#allocation10], %s1017_s28, %s1017_s28, %s1018_s29  }
  0x27   : > { %s1116_s9 = sadd.s32 1, %s1013_s18   ;;  %s29_s10 = sadd.s32 1, %s1009_s17 }
  0x28   : > { %s26_s11 = ssub.s32 %s1013_s18, %s1116_s9  ;;  %p36_p8 = scmp.ne.s32.totalorder %s1009_s17, %s1005_s16 }
  0x29   : > { %p27_p0 = scmp.eq.s32.totalorder %s26_s11, 0  ;;  %p37_p2 = scmp.eq.s32.totalorder %s1013_s18, 0 }
  0x2a   : > { %p779_p3 = scmp.lt.s32.totalorder %s1013_s18, 2  ;;  %s1126_s12 = sand.u32 1, %s1009_s17  }
  0x2b   : > { %s1129_s13 = scalar_select %p27_p0, %s1009_s17, %s29_s10  }
  0x2c   : > { %p38_p6 = por %p37_p2, %p36_p8  ;;  %s691_s14 = sshll.u32 %s1126_s12, 5 }
  0x2d   : > { %s714_s15 = sshll.u32 %s1013_s18, 9  ;;  %s185_s25 = scalar_lea.vmem [#allocation3], %s691_s14 }
  0x2e   : > { %s1136_s24 = scalar_lea.hbm %s1273_s0, %s714_s15  ;;  %s192_s26 = sshll.u32 %s185_s25, 4  ;;  %s1142_s26 = int_to_ptr.vmem [resolvable:$true] %s192_s26 }
  0x2f   : > { %p1138_p7 = pnand %p779_p3, %p38_p6  ;;  %s202_s30 = sand.u32 1, %s1013_s18  }
  0x30   : > { %s182_s5 = scalar_lea.sflag [#allocation4], %s1126_s12  ;;  %s897_s6 = scalar_lea.hbm %s1136_s24, 512 }
  0x31   : > { %p898_p9 = scmp.ne.s32.totalorder %s1136_s24, %s897_s6  ;;  %p899_p10 = pneg %p1138_p7 }
  0x32   : > { %s902_s10 = scalar_lea.hbm %s1273_s0, 1024  ;;  %p903_p13 = scmp.lt.s32.totalorder %s1136_s24, %s1273_s0 }
  0x33   : > { %p900_p11 = pnand %p899_p10, %p898_p9  ;;  %p904_p8 = scmp.lt.s32.totalorder %s902_s10, %s897_s6 }
  0x35   : > { %p901_p12 = pneg %p900_p11  ;;  %p905_p0 = por %p904_p8, %p903_p13 }
  0x37   : > { %p906_p2 = pnand %p905_p0, %p901_p12 }
  0x39   : > { %909 = shalt.err (!%p906_p2)
}
  0x3a   : > { %s910_s15 = scalar_lea.vmem %s1142_s26, 512  ;;  %s1019_s22 = smov [#allocation3]  }
  0x3b   : > { %p911_p3 = scmp.ne.s32.totalorder %s1142_s26, %s910_s15  ;;  %s915_s23 = sshll.u32 %s1019_s22, 4  ;;  %s916_s23 = int_to_ptr.vmem [resolvable:$false] %s915_s23 }
  0x3c   : > { %s917_s25 = scalar_lea.vmem %s916_s23, 1024  ;;  %p918_p11 = scmp.lt.s32.totalorder %s1142_s26, %s916_s23 }
  0x3d   : > { %p913_p6 = pnand %p911_p3, %p899_p10  ;;  %p919_p1 = scmp.lt.s32.totalorder %s917_s25, %s910_s15 }
  0x3f   : > { %p914_p9 = pneg %p913_p6  ;;  %p920_p4 = por %p919_p1, %p918_p11 }
  0x41   : > { %p921_p13 = pnand %p920_p4, %p914_p9 }
  0x43   : > { %924 = shalt.err (!%p921_p13)
}
  0x44   : > { %773 = dma.hbm_to_vmem [thread:$0]  (!%p1138_p7), %s1136_s24, 512, %s1142_s26, %s182_s5, %s1017_s28, %s1017_s28, %s1018_s29  }
  0x45   : > { %s694_s6 = sshll.u32 %s1126_s12, 4  ;;  %s715_s7 = sshll.u32 %s1013_s18, 8 }
  0x46   : > { %s1180_s11 = scalar_lea.hbm %s1274_s1, %s715_s7  ;;  %s206_s14 = scalar_lea.vmem [#allocation6], %s694_s6 }
  0x47   : > { %s213_s15 = sshll.u32 %s206_s14, 4  ;;  %s203_s22 = scalar_lea.sflag [#allocation7], %s202_s30  ;;  %s1182_s15 = int_to_ptr.vmem [resolvable:$true] %s213_s15 }
  0x48   : > { %s925_s23 = scalar_lea.hbm %s1180_s11, 256  ;;  %s930_s26 = scalar_lea.hbm %s1274_s1, 512 }
  0x49   : > { %p926_p1 = scmp.ne.s32.totalorder %s1180_s11, %s925_s23  ;;  %p931_p8 = scmp.lt.s32.totalorder %s1180_s11, %s1274_s1 }
  0x4a   : > { %p932_p0 = scmp.lt.s32.totalorder %s930_s26, %s925_s23 }
  0x4b   : > { %p928_p4 = pnand %p926_p1, %p899_p10 }
  0x4c   : > { %p933_p2 = por %p932_p0, %p931_p8 }
  0x4d   : > { %p929_p12 = pneg %p928_p4 }
  0x4f   : > { %p934_p3 = pnand %p933_p2, %p929_p12 }
  0x51   : > { %937 = shalt.err (!%p934_p3)
}
  0x52   : > { %s938_s18 = scalar_lea.vmem %s1182_s15, 256  ;;  %s1020_s30 = smov [#allocation6]  }
  0x53   : > { %p939_p6 = scmp.ne.s32.totalorder %s1182_s15, %s938_s18  ;;  %s943_s6 = sshll.u32 %s1020_s30, 4  ;;  %s944_s6 = int_to_ptr.vmem [resolvable:$false] %s943_s6 }
  0x54   : > { %s945_s7 = scalar_lea.vmem %s944_s6, 512  ;;  %p946_p13 = scmp.lt.s32.totalorder %s1182_s15, %s944_s6 }
  0x55   : > { %p941_p9 = pnand %p939_p6, %p899_p10  ;;  %p947_p1 = scmp.lt.s32.totalorder %s945_s7, %s938_s18 }
  0x57   : > { %p942_p11 = pneg %p941_p9  ;;  %p948_p4 = por %p947_p1, %p946_p13 }
  0x59   : > { %p949_p8 = pnand %p948_p4, %p942_p11 }
  0x5b   : > { %952 = shalt.err (!%p949_p8)
}
  0x5c   : > { %776 = dma.hbm_to_vmem [thread:$0]  (!%p1138_p7), %s1180_s11, 256, %s1182_s15, %s203_s22, %s1017_s28, %s1017_s28, %s1018_s29  }
  0x5d   : > { %225 = sbr.rel (%p1079_p5) target bundleno = 856 (0x358), region = 36  ;;  %s227_s8 = sand.u32 (!%p1079_p5), 1, %s1005_s16  }
  0x5e   : > { %s698_s10 = sshll.u32 (!%p1079_p5), %s227_s8, 5  ;;  %s228_s14 = scalar_lea.sflag (!%p1079_p5), [#allocation4], %s227_s8 }
  0x5f   : > { %s231_s23 = scalar_lea.vmem (!%p1079_p5), [#allocation3], %s698_s10  ;;  %p1284_p10 = scmp.ne.s32.totalorder (!%p1079_p5), %s1280_s20, 0 }
  0x62   : > { %980 = dma.done.wait (%p1284_p10), %s228_s14, 512  }
  0x63   : > { %982 = vsyncadd (%p1284_p10), %s228_s14, 4294966784  ;;  %s236_s27 = sand.u32 1, %s1067_s19   ;;  %s699_s12 = sshll.u32 %s227_s8, 4 }
  0x64   : > { %s237_s24 = scalar_lea.sflag [#allocation7], %s236_s27  ;;  %s240_s28 = scalar_lea.vmem [#allocation6], %s699_s12 }
  0x65   : > { %984 = dma.done.wait (%p1284_p10), %s237_s24, 256  }
  0x66   : > { %986 = vsyncadd (%p1284_p10), %s237_s24, 4294967040  ;;  %p1285_p5 = scmp.eq.s32.totalorder %s1067_s19, 0 }
  0x68   : > { %988 = dma.done.wait (%p1285_p5), [#allocation7], 256   ;;  %p1286_p7 = pmov %p1285_p5 }
  0x69   : > { %p1287_p12 = pmov %p1285_p5 }
  0x6a   : > { %990 = vsyncadd (%p1286_p7), [#allocation7], 4294967040 }
  0x6b   : > { %992 = dma.done.wait (%p1287_p12), [#allocation10], 256   ;;  %p1288_p0 = pmov %p1285_p5 }
  0x6c   : > { %v282_v0 = vld [vmem:[%s231_s23 + $0x8] sm:$0xff]  ;;  %v284_v1 = vld [vmem:[%s231_s23 + $0x18] sm:$0xff]  ;;  %vm331_vm0 = vcmask 130048   ;;  %v281_v5 = vld [vmem:[%s231_s23] sm:$0xff]  ;;  %s1021_s20 = smov 0.0   ;;  %p708_p6 = scmp.ne.s32.totalorder %s1067_s19, 1 }
  0x6d   : > { %994 = vsyncadd (%p1288_p0), [#allocation10], 4294967040  ;;  %v286_v2 = vld [vmem:[%s240_s28 + $0x8] sm:$0xff]  ;;  %v345_v4 = vsub.f32 %v282_v0, %v284_v1  ;;  %v283_v6 = vld [vmem:[%s231_s23 + $0x10] sm:$0xff]  ;;  %p1289_p2 = pmov %p1288_p0  ;;  %p1290_p3 = pmov %p1288_p0 }
  0x6e   : > { %v288_v3 = vcvt.s32.f32 %v286_v2  ;;  %v285_v7 = vld [vmem:[%s240_s28] sm:$0xff]  ;;  %v344_v9 = vsub.f32 %v281_v5, %v283_v6  ;;  %v359_v25 = vld [vmem:[#allocation8 + $0x8] sm:$0xff]  ;;  %v442_v26 = vld [vmem:[#allocation9 + $0x8] sm:$0xff] }
  0x6f   : > { %v287_v8 = vcvt.s32.f32 %v285_v7  ;;  %v358_v10 = vld [vmem:[#allocation8] sm:$0xff]  ;;  %v348_v13 = vmul.f32 1.442695, %v345_v4  ;;  %731 = vmatprep.subr.mxu1 %v442_v26  ;;  %v441_v27 = vld [vmem:[#allocation9] sm:$0xff]  ;;  %757 = sst [smem:[#allocation2]] (%p1289_p2), %s1021_s20 }
  0x70   : > { %v290_v11 = vsub.f32 %v282_v0, %v288_v3  ;;  %v292_v12 = vsub.f32 %v284_v1, %v288_v3  ;;  %728 = vmatprep.mubr.msk.f32.mxu0 %vm331_vm0, %v358_v10  ;;  %v346_v16 = vmul.f32 1.442695, %v344_v9  ;;  %732 = vmatpush3.msra.mxu1 %v442_v26  ;;  %758 = sst [smem:[#allocation2 + $0x1]] (%p1290_p3), %s1021_s20 }
  0x71   : > { %v289_v14 = vsub.f32 %v281_v5, %v287_v8  ;;  %v291_v15 = vsub.f32 %v283_v6, %v287_v8  ;;  %823 = vpow2.f32 %v348_v13  ;;  %733 = vmatprep.subr.mxu1 %v441_v27  ;;  %s558_s21 = sld [smem:[#allocation2]] }
  0x72   : > { %825 = vpow2.f32 %v346_v16  ;;  %734 = vmatpush3.msra.mxu1 %v441_v27  ;;  %v294_v31 = vmul.f32 %v290_v11, %v290_v11  ;;  %v312_v33 = vmul.f32 %v292_v12, %v292_v12  ;;  %s707_s15 = sld [smem:[#allocation2 + $0x1]] }
  0x73   : > { %v293_v30 = vmul.f32 %v289_v14, %v289_v14  ;;  %v311_v32 = vmul.f32 %v291_v15, %v291_v15 }
  0x74   : > { %v296_v35 = vadd.f32 1e-06, %v294_v31  ;;  %v314_v37 = vadd.f32 1e-06, %v312_v33 }
  0x75   : > { %v295_v34 = vadd.f32 1e-06, %v293_v30  ;;  %v313_v36 = vadd.f32 1e-06, %v311_v32 }
  0x76   : > { %vm306_vm3 = vcmp.eq.f32.partialorder %v296_v35, inf  ;;  %vm308_vm4 = vcmp.eq.f32.partialorder %v296_v35, 0.0  ;;  %v309_v42 = vand.u32 2147483648, %v296_v35  ;;  %vm324_vm7 = vcmp.eq.f32.partialorder %v314_v37, inf }
  0x77   : > { %vm299_vm1 = vcmp.eq.f32.partialorder %v295_v34, inf  ;;  %vm301_vm2 = vcmp.eq.f32.partialorder %v295_v34, 0.0  ;;  %v302_v39 = vand.u32 2147483648, %v295_v34  ;;  %vm317_vm5 = vcmp.eq.f32.partialorder %v313_v36, inf }
  0x78   : > { %vm319_vm6 = vcmp.eq.f32.partialorder %v313_v36, 0.0  ;;  %v320_v45 = vand.u32 2147483648, %v313_v36  ;;  %v327_v49 = vand.u32 2147483648, %v314_v37  ;;  %vm326_vm8 = vcmp.eq.f32.partialorder %v314_v37, 0.0 }
  0x7e   : > { %v824_v17 = vpop.eup %823 }
  0x7f   : > { %v826_v18 = vpop.eup %825  ;;  %v351_v19 = vadd.f32 1.0, %v824_v17 }
  0x80   : > { %v350_v20 = vadd.f32 1.0, %v826_v18 }
  0x81   : > { %827 = vrcp.f32 %v351_v19 }
  0x82   : > { %829 = vrcp.f32 %v350_v20 }
  0x83   : > { %831 = vrsqrt.f32 %v295_v34 }
  0x84   : > { %833 = vrsqrt.f32 %v296_v35 }
  0x85   : > { %835 = vrsqrt.f32 %v313_v36 }
  0x86   : > { %837 = vrsqrt.f32 %v314_v37 }
  0x8e   : > { %v828_v21 = vpop.eup %827 }
  0x8f   : > { %v830_v22 = vpop.eup %829  ;;  %v1232_v23 = vsub.f32 %v828_v21, %v288_v3 }
  0x90   : > { %v1234_v24 = vsub.f32 %v830_v22, %v287_v8  ;;  %v832_v38 = vpop.eup %831 }
  0x91   : > { %724 = vmatprep.subr.mxu0 %v1232_v23  ;;  %v834_v40 = vpop.eup %833  ;;  %v298_v41 = vmul.f32 %v832_v38, %v295_v34 }
  0x92   : > { %725 = vmatpush3.msra.mxu0 %v1232_v23  ;;  %v836_v43 = vpop.eup %835  ;;  %v305_v44 = vmul.f32 %v834_v40, %v296_v35 }
  0x93   : > { %726 = vmatprep.subr.mxu0 %v1234_v24  ;;  %v838_v46 = vpop.eup %837  ;;  %v300_v47 = vsel %vm299_vm1, %v295_v34, %v298_v41  ;;  %v316_v48 = vmul.f32 %v836_v43, %v313_v36 }
  0x94   : > { %727 = vmatpush3.msra.mxu0 %v1234_v24  ;;  %v303_v50 = vsel %vm301_vm2, %v302_v39, %v300_v47  ;;  %v307_v51 = vsel %vm306_vm3, %v296_v35, %v305_v44  ;;  %v323_v52 = vmul.f32 %v838_v46, %v314_v37 }
  0x95   : > { %729 = vmatmul.mubr.msk.f32.vlgmr.msra.gmra.mxu0 %vm331_vm0, %v359_v25  ;;  %v310_v53 = vsel %vm308_vm4, %v309_v42, %v307_v51  ;;  %v318_v54 = vsel %vm317_vm5, %v313_v36, %v316_v48 }
  0x96   : > { %v321_v55 = vsel %vm319_vm6, %v320_v45, %v318_v54  ;;  %v325_v56 = vsel %vm324_vm7, %v314_v37, %v323_v52 }
  0x97   : > { %v328_v57 = vsel %vm326_vm8, %v327_v49, %v325_v56  ;;  %v329_v58 = vadd.f32 %v321_v55, %v303_v50 }
  0x98   : > { %v330_v59 = vadd.f32 %v328_v57, %v310_v53 }
  0x99   : > { %v332_v60 = vsel %vm331_vm0, %v329_v58, 0.0 }
  0x9a   : > { %v333_v61 = vsel %vm331_vm0, %v330_v59, 0.0 }
  0x9b   : > { %v334_v62 = vadd.f32 %v333_v61, %v332_v60 }
  0x9d   : > { %335 = vadd.xlane.f32.xlu0 %v334_v62 }
 0x126   : > { %v336_v22 = vpop.xlane.xlu0 %335 }
 0x155   : > { %v730_v28 = vpop.f32.mrf.mxu0 }
 0x157   : > { %v432_v29 = vpop.f32.mrf.mxu0 }
 0x158   : > { %735 = vmatprep.mubr.msk.f32.mxu1 %vm331_vm0, %v432_v29 }
 0x159   : > { %736 = vmatmul.mubr.msk.f32.vlgmr.msra.gmra.mxu1 %vm331_vm0, %v730_v28 }
 0x219   : > { %v737_v63 = vpop.f32.mrf.mxu1 }
 0x21a   : > { %v525_v0 = vmul.f32 4.0, %v737_v63 }
 0x21b   : > { %v515_v1 = vpop.f32.mrf.mxu1 }
 0x21c   : > { %v527_v2 = vsub.f32 %v1232_v23, %v525_v0  ;;  %v524_v3 = vmul.f32 4.0, %v515_v1  ;;  %v337_v23 = vrot.slane %v336_v22, 4 }
 0x21e   : > { %v529_v4 = vmul.f32 %v527_v2, %v527_v2  ;;  %v526_v5 = vsub.f32 %v1234_v24, %v524_v3  ;;  %v338_v24 = vadd.f32 %v337_v23, %v336_v22 }
 0x220   : > { %v531_v6 = vadd.f32 1e-06, %v529_v4  ;;  %v528_v7 = vmul.f32 %v526_v5, %v526_v5  ;;  %v339_v25 = vrot.slane %v338_v24, 2 }
 0x222   : > { %839 = vrsqrt.f32 %v531_v6  ;;  %v530_v8 = vadd.f32 1e-06, %v528_v7  ;;  %vm541_vm9 = vcmp.eq.f32.partialorder %v531_v6, inf  ;;  %v544_v12 = vand.u32 2147483648, %v531_v6 }
 0x223   : > { %vm543_vm10 = vcmp.eq.f32.partialorder %v531_v6, 0.0  ;;  %v340_v26 = vadd.f32 %v339_v25, %v338_v24 }
 0x224   : > { %841 = vrsqrt.f32 %v530_v8  ;;  %vm534_vm11 = vcmp.eq.f32.partialorder %v530_v8, inf  ;;  %v537_v15 = vand.u32 2147483648, %v530_v8  ;;  %vm536_vm12 = vcmp.eq.f32.partialorder %v530_v8, 0.0 }
 0x225   : > { %v341_v27 = vrot.slane %v340_v26, 1 }
 0x227   : > { %v342_v28 = vadd.f32 %v341_v27, %v340_v26 }
 0x229   : > { %738 = vpush %v342_v28 }
 0x22f   : > { %v840_v9 = vpop.eup %839 }
 0x230   : > { %v540_v10 = vmul.f32 %v840_v9, %v531_v6 }
 0x231   : > { %v842_v11 = vpop.eup %841 }
 0x232   : > { %v533_v13 = vmul.f32 %v842_v11, %v530_v8  ;;  %v542_v14 = vsel %vm541_vm9, %v531_v6, %v540_v10 }
 0x233   : > { %v545_v16 = vsel %vm543_vm10, %v544_v12, %v542_v14 }
 0x234   : > { %v535_v17 = vsel %vm534_vm11, %v530_v8, %v533_v13  ;;  %v547_v20 = vsel %vm331_vm0, %v545_v16, 0.0 }
 0x235   : > { %v538_v18 = vsel %vm536_vm12, %v537_v15, %v535_v17 }
 0x236   : > { %v546_v19 = vsel %vm331_vm0, %v538_v18, 0.0 }
 0x237   : > { %v548_v21 = vadd.f32 %v547_v20, %v546_v19 }
 0x239   : > { %549 = vadd.xlane.f32.xlu0 %v548_v21 }
 0x25a   : > { %s739_s29 = spop %738 }
 0x25b   : > { %s559_s11 = sadd.f32 %s739_s29, %s558_s21 }
 0x25d   : > { %561 = sst [smem:[#allocation2]] %s559_s11 }
 0x25e   : > { %s570_s5 = sld [smem:[#allocation2]] (!%p708_p6) }
 0x264   : > { %s573_s18 = smul.f32 (!%p708_p6), 0.0009765625, %s570_s5 }
 0x266   : > { %s582_s6 = smul.f32 (!%p708_p6), %s573_s18, %s573_s18 }
 0x2c2   : > { %v550_v29 = vpop.xlane.xlu0 %549 }
 0x2c3   : > { %v551_v30 = vrot.slane %v550_v29, 4 }
 0x2c5   : > { %v552_v31 = vadd.f32 %v551_v30, %v550_v29 }
 0x2c7   : > { %v553_v32 = vrot.slane %v552_v31, 2 }
 0x2c9   : > { %v554_v33 = vadd.f32 %v553_v32, %v552_v31 }
 0x2cb   : > { %v555_v34 = vrot.slane %v554_v33, 1 }
 0x2cd   : > { %v556_v35 = vadd.f32 %v555_v34, %v554_v33 }
 0x2cf   : > { %740 = vpush %v556_v35 }
 0x2ff   : > { %569 = sbr.rel (%p708_p6) target bundleno = 850 (0x352), region = 60 }
 0x300   : > { %s741_s22 = spop %740 }
 0x301   : > { %s563_s26 = sadd.f32 %s741_s22, %s707_s15 }
 0x303   : > { %565 = sst [smem:[#allocation2 + $0x1]] %s563_s26 }
 0x304   : > { %s709_s25 = sld [smem:[#allocation2 + $0x1]] }
 0x30a   : > { %s577_s30 = smul.f32 0.001953125, %s709_s25 }
 0x30c   : > { %s578_s7 = sadd.f32 %s577_s30, %s573_s18  ;;  %s583_s8 = smul.f32 %s577_s30, %s577_s30 }
 0x30e   : > { %v579_v36 = vstv %s578_s7  ;;  %s584_s10 = sadd.f32 %s583_s8, %s582_s6 }
 0x30f   : > { %843 = vrcp.f32 %v579_v36 }
 0x31c   : > { %v844_v37 = vpop.eup %843 }
 0x31d   : > { %742 = vpush %v844_v37 }
 0x34e   : > { %s743_s14 = spop %742 }
 0x34f   : > { %s585_s23 = smul.f32 %s743_s14, %s584_s10 }
 0x351   : > { %587 = sst [smem:[#allocation11]] %s585_s23 }
 0x352 PF: > { %p783_p9 = scmp.eq.s32.totalorder %s1067_s19, 1  ;;  %s1022_s27 = smov [#allocation11]  }
 0x354   : > { %760 = dma.smem_to_hbm (%p783_p9), %s1022_s27, 16, %s1277_s4, [#allocation5]  }
 0x355   : > { %996 = dma.done.wait (%p783_p9), [#allocation5], 16  }
 0x356   : > { %998 = vsyncadd (%p783_p9), [#allocation5], 4294967280 }
 0x357   : > { %601 = sfence }
 0x358 PF: > { %p19_p11 = scmp.ge.s32.totalorder %s1116_s9, 4   ;;  %s1291_s15 = smov %s1005_s16 }
 0x359   : > { %s1292_s16 = smov %s1009_s17  ;;  %s1293_s17 = smov %s1129_s13 }
 0x35a   : > { %s1294_s18 = smov %s1116_s9  ;;  %21 = sbr.rel (!%p19_p11) target bundleno = 7 (0x7), region = 107 }
 0x35f   :  { %607 = vsyncpa [#allocation4], 1 }
 0x360   :  { %609 = vsyncpa [#allocation4 + $0x1], 1 }
 0x361   :  { %610 = vsyncpa [#allocation7], 1 }
 0x362   :  { %612 = vsyncpa [#allocation7 + $0x1], 1 }
 0x363   :  { %613 = vsyncpa [#allocation10], 1 }
 0x364   :  { %614 = vsyncpa [#allocation5], 1 }
 0x365   :  { %616 = vsyncpa [#allocation5 + $0x1], 1 }

</bundles_post_ra>
